<compile_context>
chip_gen: v7x
topology: tpu7x:2x2x1
jax: 0.10.0
libtpu: 0.0.40
codegen_flags: <defaults>
</compile_context>

<pallas_src>
import functools

import jax
import jax.numpy as jnp
from jax.experimental import pallas as pl
from jax.experimental.pallas import tpu as pltpu


# ----------------------------------------------------------------------------- utilities


def _round_up(v, m):
    return (v + m - 1) // m * m


def _vmem_capacity_bytes():
    """Per-core VMEM capacity; conservative (v7x) fallback if the query is unavailable."""
    try:
        return int(pltpu.get_tpu_info().vmem_capacity_bytes)
    except Exception:
        return 64 * 1024 * 1024


def _choose_row_tiling(n, max_tm):
    """Pick a row tile with <=12.5% pad waste; rows pad only to the bf16 granule (16)."""
    tm, rows_p = 16, _round_up(n, 16)
    for cand in (1024, 512, 256, 128, 64, 32):
        if cand > max_tm:
            continue
        padded = _round_up(n, cand)
        if padded <= 1.125 * max(n, 1):
            tm, rows_p = cand, padded
            break
    # v7x megacore: keep >=2 grid steps when possible so both TensorCores get rows.
    while rows_p // tm < 2 and tm > 16:
        tm //= 2
        rows_p = _round_up(n, tm)
    return tm, rows_p


def _choose_h_chunk(hp):
    """Largest lane chunk (<=512) that evenly divides the padded hidden dim."""
    for c in (512, 384, 256, 128):
        if hp % c == 0:
            return c
    return hp


def _pinned_spec(shape):
    """Block pinned to block (0, ...) across the row grid; single-buffered (DMA'd once)."""
    idx = lambda i: (0,) * len(shape)
    try:
        return pl.BlockSpec(shape, idx, pipeline_mode=pl.Buffered(1))
    except TypeError:  # older API without pipeline_mode: fall back to default buffering
        return pl.BlockSpec(shape, idx)


# ----------------------------------------------------------------------------- kernel


def _mlp_kernel(x_ref, w1_ref, s1_ref, t1_ref, w2_ref, b2_ref, o_ref, *, n_chunks, h_chunk):
    # x_ref : (tm, Dp) bf16   w1_ref : (Dp, Hp) bf16   w2_ref : (Hp, Op) bf16
    # s1/t1 : (1, Hp)  f32  (folded BN scale / folded Linear-1-bias + BN shift)
    # b2    : (1, Op)  f32   o_ref  : (tm, Op) out_dtype
    x = x_ref[...]
    acc = jnp.zeros(o_ref.shape, jnp.float32)
    # Static chunk loop over the hidden dim: lets the LLO scheduler overlap the VPU epilogue
    # of chunk c with the MXU pushes of chunk c+/-1, and bounds the live f32 intermediate.
    for c in range(n_chunks):
        lo, hi = c * h_chunk, (c + 1) * h_chunk
        t = jnp.dot(x, w1_ref[:, lo:hi], preferred_element_type=jnp.float32)
        t = t * s1_ref[:, lo:hi] + t1_ref[:, lo:hi]      # Linear-1 bias + eval BN (folded)
        t = jnp.maximum(t, 0.0).astype(jnp.bfloat16)     # ReLU + MXU-operand cast
        acc = acc + jnp.dot(t, w2_ref[lo:hi, :], preferred_element_type=jnp.float32)
    o_ref[...] = (acc + b2_ref[...]).astype(o_ref.dtype)


# ----------------------------------------------------------------------------- wrapper


def prepare_params(raw, bn_eps=None):
    """One-time parameter prep: fold eval BatchNorm + Linear-1 bias, pad to 128 lanes, bf16-cast.

    Hoisted out of the per-call forward so repeated calls do not re-stream weights through HBM.
    """
    eps = raw["bn_eps"] if bn_eps is None else bn_eps
    w1, b1 = raw["w1"], raw["b1"]
    w2, b2 = raw["w2"], raw["b2"]
    gamma, beta, rm, rv = raw["gamma"], raw["beta"], raw["rm"], raw["rv"]

    in_dim, hid = w1.shape
    out_dim = w2.shape[1]

    s1 = gamma / jnp.sqrt(rv + eps)        # folded BN scale
    t1 = (b1 - rm) * s1 + beta             # Linear-1 bias + BN mean/beta folded into shift

    dp = _round_up(in_dim, 128)
    hp = _round_up(hid, 128)
    op = _round_up(out_dim, 128)

    return dict(
        w1=jnp.pad(w1.astype(jnp.bfloat16), ((0, dp - in_dim), (0, hp - hid))),
        w2=jnp.pad(w2.astype(jnp.bfloat16), ((0, hp - hid), (0, op - out_dim))),
        s1=jnp.pad(s1.astype(jnp.float32), ((0, 0), (0, hp - hid))),
        t1=jnp.pad(t1.astype(jnp.float32), ((0, 0), (0, hp - hid))),
        b2=jnp.pad(b2.astype(jnp.float32), ((0, 0), (0, op - out_dim))),
        in_dim=in_dim, hid=hid, out_dim=out_dim, dp=dp, hp=hp, op=op,
    )


def mlp_forward(x, prep, *, out_dtype=jnp.float32, block_m=None, vmem_limit_bytes=None):
    n, in_dim = x.shape
    assert in_dim == prep["in_dim"], "input feature dim mismatch"
    dp, hp, op = prep["dp"], prep["hp"], prep["op"]
    out_dim = prep["out_dim"]

    # Generation-aware defaults: bigger tiles/budget on 128-MiB-VMEM chips (v5e/v6e),
    # headroom for Mosaic scratch on v7x (64 MiB per TensorCore).
    vmem_cap = _vmem_capacity_bytes()
    if vmem_limit_bytes is None:
        vmem_limit_bytes = max(min(vmem_cap - 12 * 1024 * 1024, 112 * 1024 * 1024),
                               32 * 1024 * 1024)
    if block_m is None:
        block_m = 512 if vmem_cap >= 100 * 1024 * 1024 else 256

    tm, rows_p = _choose_row_tiling(n, block_m)

    # Only pad/cast the activation when actually needed (no extra full HBM pass otherwise).
    if x.dtype == jnp.bfloat16 and rows_p == n and dp == in_dim:
        x_p = x
    else:
        x_p = jnp.pad(x.astype(jnp.bfloat16), ((0, rows_p - n), (0, dp - in_dim)))

    h_chunk = _choose_h_chunk(hp)
    kernel = functools.partial(_mlp_kernel, n_chunks=hp // h_chunk, h_chunk=h_chunk)

    flops = 2 * rows_p * (dp * hp + hp * op)
    bytes_accessed = (rows_p * dp * 2 + dp * hp * 2 + hp * op * 2
                      + (2 * hp + op) * 4
                      + rows_p * op * jnp.dtype(out_dtype).itemsize)
    cost = pl.CostEstimate(flops=flops, transcendentals=0, bytes_accessed=bytes_accessed)

    out_p = pl.pallas_call(
        kernel,
        out_shape=jax.ShapeDtypeStruct((rows_p, op), out_dtype),
        grid=(rows_p // tm,),
        in_specs=[
            pl.BlockSpec((tm, dp), lambda i: (i, 0)),   # x: tiled over rows (double-buffered)
            _pinned_spec((dp, hp)),                     # w1 (bf16, single-buffered)
            _pinned_spec((1, hp)),                      # folded BN scale
            _pinned_spec((1, hp)),                      # folded Linear-1 bias + BN shift
            _pinned_spec((hp, op)),                     # w2 (bf16, single-buffered)
            _pinned_spec((1, op)),                      # b2
        ],
        out_specs=pl.BlockSpec((tm, op), lambda i: (i, 0)),
        compiler_params=pltpu.CompilerParams(
            dimension_semantics=("parallel",),
            vmem_limit_bytes=int(vmem_limit_bytes),
        ),
        cost_estimate=cost,
    )(x_p, prep["w1"], prep["s1"], prep["t1"], prep["w2"], prep["b2"])

    return out_p[:n, :out_dim]


# ----------------------------------------------------------------------------- test harness


def make_params(key, in_dim, out_dim):
    """Deterministic synthetic parameters matching MLP(in_dim, out_dim).__init__ shapes."""
    hid = 2 * in_dim
    ks = jax.random.split(key, 8)
    w1 = jax.random.normal(ks[0], (in_dim, hid), jnp.float32) * 0.1
    b1 = jax.random.normal(ks[1], (1, hid), jnp.float32) * 0.1
    w2 = jax.random.normal(ks[2], (hid, out_dim), jnp.float32) * 0.1
    b2 = jax.random.normal(ks[3], (1, out_dim), jnp.float32) * 0.1
    # BatchNorm1d(2*in_dim) eval-mode parameters / running stats.
    gamma = 1.0 + 0.1 * jax.random.normal(ks[4], (1, hid), jnp.float32)
    beta = 0.1 * jax.random.normal(ks[5], (1, hid), jnp.float32)
    rm = 0.1 * jax.random.normal(ks[6], (1, hid), jnp.float32)
    rv = 1.0 + 0.1 * jnp.abs(jax.random.normal(ks[7], (1, hid), jnp.float32))
    return dict(w1=w1, b1=b1, w2=w2, b2=b2, gamma=gamma, beta=beta, rm=rm, rv=rv, bn_eps=1e-5)


def reference_forward(x, p):
    """Pure-JAX f32 reference of MLP.forward in eval mode (unfolded params)."""
    t = x @ p["w1"] + p["b1"]
    t = (t - p["rm"]) / jnp.sqrt(p["rv"] + p["bn_eps"]) * p["gamma"] + p["beta"]
    t = jnp.maximum(t, 0.0)
    return t @ p["w2"] + p["b2"]


if __name__ == "__main__":
    in_dim = 32
    out_dim = 32
    n = 16

    key = jax.random.PRNGKey(0)
    k_x, k_p = jax.random.split(key, 2)

    x = jax.random.normal(k_x, (n, in_dim), jnp.float32)
    raw = make_params(k_p, in_dim, out_dim)
    prep = prepare_params(raw)          # one-time fold + pad + bf16 cast (hoisted out of forward)

    out = mlp_forward(x, prep)
    out = jax.block_until_ready(out)

    ref = reference_forward(x, raw)
    assert out.shape == (n, out_dim)
    # bf16 MXU operands with f32 accumulation -> compare against the f32 reference loosely.
    assert jnp.allclose(out, ref, atol=2e-2, rtol=2e-2), "mismatch vs JAX reference"

    print("KERNEL_OK")
</pallas_src>

<mosaic_0001>
module attributes {stable_mosaic.version = 11 : i64} {
  func.func @_mlp_kernel(%arg0: i32, %arg1: memref<16x128xbf16, #tpu.memory_space<vmem>>, %arg2: memref<128x128xbf16, #tpu.memory_space<vmem>>, %arg3: memref<1x128xf32, #tpu.memory_space<vmem>>, %arg4: memref<1x128xf32, #tpu.memory_space<vmem>>, %arg5: memref<128x128xbf16, #tpu.memory_space<vmem>>, %arg6: memref<1x128xf32, #tpu.memory_space<vmem>>, %arg7: memref<16x128xf32, #tpu.memory_space<vmem>>) attributes {dimension_semantics = [#tpu.dimension_semantics<parallel>], iteration_bounds = array<i64: 1>, scalar_prefetch = 0 : i64, scratch_operands = 0 : i64, tpu.core_type = #tpu.core_type<tc>, window_params = [{transform_indices = @transform_0, window_bounds = array<i64: 16, 128>}, {pipeline_mode = #tpu.pipeline_mode<synchronous>, transform_indices = @transform_1, window_bounds = array<i64: 128, 128>}, {pipeline_mode = #tpu.pipeline_mode<synchronous>, transform_indices = @transform_2, window_bounds = array<i64: 1, 128>}, {pipeline_mode = #tpu.pipeline_mode<synchronous>, transform_indices = @transform_3, window_bounds = array<i64: 1, 128>}, {pipeline_mode = #tpu.pipeline_mode<synchronous>, transform_indices = @transform_4, window_bounds = array<i64: 128, 128>}, {pipeline_mode = #tpu.pipeline_mode<synchronous>, transform_indices = @transform_5, window_bounds = array<i64: 1, 128>}, {transform_indices = @transform_6, window_bounds = array<i64: 16, 128>}]} {
    %c0 = arith.constant 0 : index
    %c0_0 = arith.constant 0 : index
    %0 = vector.load %arg1[%c0, %c0_0] : memref<16x128xbf16, #tpu.memory_space<vmem>>, vector<16x128xbf16>
    %cst = arith.constant 0.000000e+00 : f32
    %1 = vector.broadcast %cst : f32 to vector<16x128xf32>
    %c0_1 = arith.constant 0 : index
    %c0_2 = arith.constant 0 : index
    %2 = vector.load %arg2[%c0_1, %c0_2] : memref<128x128xbf16, #tpu.memory_space<vmem>>, vector<128x128xbf16>
    %cst_3 = arith.constant dense<0.000000e+00> : vector<16x128xf32>
    %3 = tpu.matmul %0, %2, %cst_3 {dimension_numbers = #tpu.dot_dimension_numbers<[1], [0], [0], [1], [0, 0, 1, 1], [], []>} : vector<16x128xbf16>, vector<128x128xbf16>, vector<16x128xf32> -> vector<16x128xf32>
    %c0_4 = arith.constant 0 : index
    %c0_5 = arith.constant 0 : index
    %4 = vector.load %arg3[%c0_4, %c0_5] : memref<1x128xf32, #tpu.memory_space<vmem>>, vector<1x128xf32>
    %5 = vector.broadcast %4 : vector<1x128xf32> to vector<16x128xf32>
    %6 = arith.mulf %3, %5 : vector<16x128xf32>
    %c0_6 = arith.constant 0 : index
    %c0_7 = arith.constant 0 : index
    %7 = vector.load %arg4[%c0_6, %c0_7] : memref<1x128xf32, #tpu.memory_space<vmem>>, vector<1x128xf32>
    %8 = vector.broadcast %7 : vector<1x128xf32> to vector<16x128xf32>
    %9 = arith.addf %6, %8 : vector<16x128xf32>
    %cst_8 = arith.constant 0.000000e+00 : f32
    %10 = vector.broadcast %cst_8 : f32 to vector<16x128xf32>
    %11 = arith.maximumf %9, %10 : vector<16x128xf32>
    %12 = arith.truncf %11 : vector<16x128xf32> to vector<16x128xbf16>
    %c0_9 = arith.constant 0 : index
    %c0_10 = arith.constant 0 : index
    %13 = vector.load %arg5[%c0_9, %c0_10] : memref<128x128xbf16, #tpu.memory_space<vmem>>, vector<128x128xbf16>
    %cst_11 = arith.constant dense<0.000000e+00> : vector<16x128xf32>
    %14 = tpu.matmul %12, %13, %cst_11 {dimension_numbers = #tpu.dot_dimension_numbers<[1], [0], [0], [1], [0, 0, 1, 1], [], []>} : vector<16x128xbf16>, vector<128x128xbf16>, vector<16x128xf32> -> vector<16x128xf32>
    %15 = arith.addf %1, %14 : vector<16x128xf32>
    %c0_12 = arith.constant 0 : index
    %c0_13 = arith.constant 0 : index
    %16 = vector.load %arg6[%c0_12, %c0_13] : memref<1x128xf32, #tpu.memory_space<vmem>>, vector<1x128xf32>
    %17 = vector.broadcast %16 : vector<1x128xf32> to vector<16x128xf32>
    %18 = arith.addf %15, %17 : vector<16x128xf32>
    %c0_14 = arith.constant 0 : index
    %c0_15 = arith.constant 0 : index
    %19 = vector.load %arg7[%c0_14, %c0_15] : memref<16x128xf32, #tpu.memory_space<vmem>>, vector<16x128xf32>
    tpu.vector_store %arg7[%c0_14, %c0_15], %18 {strides = array<i32>} : memref<16x128xf32, #tpu.memory_space<vmem>>, vector<16x128xf32>,
    return
  }
  func.func @transform_0(%arg0: i32) -> (i32, i32) {
    %c0_i32 = arith.constant 0 : i32
    %c0_i32_0 = arith.constant 0 : i32
    return %arg0, %c0_i32 : i32, i32
  }
  func.func @transform_1(%arg0: i32) -> (i32, i32) {
    %c0_i32 = arith.constant 0 : i32
    %c0_i32_0 = arith.constant 0 : i32
    %c0_i32_1 = arith.constant 0 : i32
    return %c0_i32, %c0_i32_0 : i32, i32
  }
  func.func @transform_2(%arg0: i32) -> (i32, i32) {
    %c0_i32 = arith.constant 0 : i32
    %c0_i32_0 = arith.constant 0 : i32
    %c0_i32_1 = arith.constant 0 : i32
    return %c0_i32, %c0_i32_0 : i32, i32
  }
  func.func @transform_3(%arg0: i32) -> (i32, i32) {
    %c0_i32 = arith.constant 0 : i32
    %c0_i32_0 = arith.constant 0 : i32
    %c0_i32_1 = arith.constant 0 : i32
    return %c0_i32, %c0_i32_0 : i32, i32
  }
  func.func @transform_4(%arg0: i32) -> (i32, i32) {
    %c0_i32 = arith.constant 0 : i32
    %c0_i32_0 = arith.constant 0 : i32
    %c0_i32_1 = arith.constant 0 : i32
    return %c0_i32, %c0_i32_0 : i32, i32
  }
  func.func @transform_5(%arg0: i32) -> (i32, i32) {
    %c0_i32 = arith.constant 0 : i32
    %c0_i32_0 = arith.constant 0 : i32
    %c0_i32_1 = arith.constant 0 : i32
    return %c0_i32, %c0_i32_0 : i32, i32
  }
  func.func @transform_6(%arg0: i32) -> (i32, i32) {
    %c0_i32 = arith.constant 0 : i32
    %c0_i32_0 = arith.constant 0 : i32
    return %arg0, %c0_i32 : i32, i32
  }
}

</mosaic_0001>

<bundles_post_ra>
// kernel: tpu_custom_call.1
= control target key start
LH: loop header
LB: loop body
LE: loop exit
PB: predicated region body
PF: predicated region fallthrough
CT: control target
= control target key end

     0   :  { %11 = vsyncpa [#allocation3], 0  ;;  %s649_s0 = inlined_call_operand.hbm [shape: bf16[16,128], index: 0, kind: input, shape index: {}]   ;;  %s650_s1 = inlined_call_operand.hbm [shape: bf16[128,128], index: 1, kind: input, shape index: {}]   ;;  %s651_s2 = inlined_call_operand.vmem [shape: f32[1,128], index: 2, kind: input, shape index: {}]   ;;  %s652_s3 = inlined_call_operand.vmem [shape: f32[1,128], index: 3, kind: input, shape index: {}]   ;;  %s653_s4 = inlined_call_operand.hbm [shape: bf16[128,128], index: 4, kind: input, shape index: {}]   ;;  %s654_s5 = inlined_call_operand.vmem [shape: f32[1,128], index: 5, kind: input, shape index: {}]   ;;  %s655_s6 = inlined_call_operand.hbm [shape: f32[16,128], index: 6, kind: output, shape index: {}]  }
   0x1   :  { %12 = vsyncpa [#allocation6], 0 }
   0x2   :  { %13 = vsyncpa [#allocation4], 0  ;;  %s531_s21 = smov [#allocation5]   ;;  %s532_s23 = smov [#allocation2]  }
   0x3   :  { %s31_s22 = sshll.u32 %s531_s21, 4  ;;  %s19_s24 = sshll.u32 %s532_s23, 4  ;;  %s32_s22 = int_to_ptr.vmem [resolvable:$true] %s31_s22  ;;  %s576_s24 = int_to_ptr.vmem [resolvable:$true] %s19_s24 }
   0x4   :  { %s437_s27 = scalar_lea.hbm %s650_s1, 1024 }
   0x5   :  { %p438_p0 = scmp.ne.s32.totalorder %s650_s1, %s437_s27  ;;  %p441_p1 = scmp.lt.u32.totalorder %s437_s27, %s650_s1 }
   0x7   :  { %p443_p2 = pnand %p441_p1, %p438_p0 }
   0x9   :  { %446 = shalt.err (!%p443_p2)
}
   0xa   :  { %s447_s8 = scalar_lea.vmem %s32_s22, 1024  ;;  %p452_p4 = scmp.lt.s32.totalorder %s32_s22, %s32_s22 }
   0xb   :  { %p448_p3 = scmp.ne.s32.totalorder %s32_s22, %s447_s8  ;;  %p453_p5 = scmp.lt.s32.totalorder %s447_s8, %s447_s8 }
   0xd   :  { %p454_p6 = por %p453_p5, %p452_p4 }
   0xf   :  { %p455_p7 = pnand %p454_p6, %p448_p3 }
  0x11   :  { %458 = shalt.err (!%p455_p7)
}
  0x12   :  { %s533_s9 = smov 64   ;;  %s534_s10 = smov 4  }
  0x13   :  { %37 = dma.hbm_to_vmem [thread:$0]  %s650_s1, 1024, %s32_s22, [#allocation6], %s533_s9, %s533_s9, %s534_s10  }
  0x14   :  { %s459_s15 = scalar_lea.hbm %s649_s0, 128 }
  0x15   :  { %p460_p8 = scmp.ne.s32.totalorder %s649_s0, %s459_s15  ;;  %p463_p9 = scmp.lt.u32.totalorder %s459_s15, %s649_s0 }
  0x17   :  { %p465_p10 = pnand %p463_p9, %p460_p8 }
  0x19   :  { %468 = shalt.err (!%p465_p10)
}
  0x1a   :  { %s469_s20 = scalar_lea.vmem %s576_s24, 128  ;;  %p474_p12 = scmp.lt.s32.totalorder %s576_s24, %s576_s24 }
  0x1b   :  { %p470_p11 = scmp.ne.s32.totalorder %s576_s24, %s469_s20  ;;  %p475_p13 = scmp.lt.s32.totalorder %s469_s20, %s469_s20 }
  0x1d   :  { %p476_p0 = por %p475_p13, %p474_p12 }
  0x1f   :  { %p477_p1 = pnand %p476_p0, %p470_p11 }
  0x21   :  { %480 = shalt.err (!%p477_p1)
}
  0x22   :  { %25 = dma.hbm_to_vmem [thread:$0]  %s649_s0, 128, %s576_s24, [#allocation3], %s533_s9, %s533_s9, %s534_s10  }
  0x23   :  { %s535_s22 = smov [#allocation7]   ;;  %s481_s27 = scalar_lea.hbm %s653_s4, 1024 }
  0x24   :  { %s47_s23 = sshll.u32 %s535_s22, 4  ;;  %p482_p2 = scmp.ne.s32.totalorder %s653_s4, %s481_s27  ;;  %s48_s23 = int_to_ptr.vmem [resolvable:$true] %s47_s23 }
  0x25   :  { %p485_p3 = scmp.lt.u32.totalorder %s481_s27, %s653_s4 }
  0x27   :  { %p487_p4 = pnand %p485_p3, %p482_p2 }
  0x29   :  { %490 = shalt.err (!%p487_p4)
}
  0x2a   :  { %s491_s8 = scalar_lea.vmem %s48_s23, 1024  ;;  %p496_p6 = scmp.lt.s32.totalorder %s48_s23, %s48_s23 }
  0x2b   :  { %p492_p5 = scmp.ne.s32.totalorder %s48_s23, %s491_s8  ;;  %p497_p7 = scmp.lt.s32.totalorder %s491_s8, %s491_s8 }
  0x2d   :  { %p498_p8 = por %p497_p7, %p496_p6 }
  0x2f   :  { %p499_p9 = pnand %p498_p8, %p492_p5 }
  0x31   :  { %502 = shalt.err (!%p499_p9)
}
  0x32   :  { %53 = dma.hbm_to_vmem [thread:$0]  %s653_s4, 1024, %s48_s23, [#allocation6], %s533_s9, %s533_s9, %s534_s10  }
  0x33   :  { %525 = dma.done.wait [#allocation3], 128  }
  0x34   :  { %526 = vsyncadd [#allocation3], 4294967168 }
  0x35   :  { %527 = dma.done.wait [#allocation6], 2048  }
  0x36   :  { %528 = vsyncadd [#allocation6], 4294965248  ;;  %v536_v0 = vmov 0.0   ;;  %vm537_vm0 = vmmov 0   ;;  %v420_v1 = vld [vmem:[#allocation5] sm:$0xff]   ;;  %v421_v2 = vld [vmem:[#allocation5 + $0x8] sm:$0xff]  }
  0x37   :  { %370 = vmatprep.subr.bf16.mxu0 %v536_v0  ;;  %386 = vmatprep.mubr.msk.bf16.mxu0 %vm537_vm0, %v536_v0  ;;  %v422_v3 = vld [vmem:[#allocation5 + $0x10] sm:$0xff]   ;;  %v429_v4 = vld [vmem:[#allocation7] sm:$0xff]   ;;  %v423_v5 = vld [vmem:[#allocation5 + $0x18] sm:$0xff]  }
  0x38   :  { %390 = vmatprep.subr.bf16.mxu1 %v536_v0  ;;  %406 = vmatprep.mubr.msk.bf16.mxu1 %vm537_vm0, %v536_v0  ;;  %v430_v6 = vld [vmem:[#allocation7 + $0x8] sm:$0xff]   ;;  %v424_v7 = vld [vmem:[#allocation5 + $0x20] sm:$0xff]   ;;  %v431_v8 = vld [vmem:[#allocation7 + $0x10] sm:$0xff]  }
  0x39   :  { %371 = vmatpush3.bf16.msra.mxu0 %v420_v1  ;;  %391 = vmatpush3.bf16.msra.mxu1 %v429_v4  ;;  %v425_v9 = vld [vmem:[#allocation5 + $0x28] sm:$0xff]   ;;  %v432_v10 = vld [vmem:[#allocation7 + $0x18] sm:$0xff]   ;;  %v426_v11 = vld [vmem:[#allocation5 + $0x30] sm:$0xff]  }
  0x3a   :  { %372 = vmatprep.subr.bf16.mxu0 %v536_v0  ;;  %392 = vmatprep.subr.bf16.mxu1 %v536_v0  ;;  %v433_v12 = vld [vmem:[#allocation7 + $0x20] sm:$0xff]   ;;  %v427_v13 = vld [vmem:[#allocation5 + $0x38] sm:$0xff]   ;;  %v434_v15 = vld [vmem:[#allocation7 + $0x28] sm:$0xff]  }
  0x3b   :  { %v428_v14 = vld [vmem:[#allocation2] sm:$0xff]   ;;  %v435_v16 = vld [vmem:[#allocation7 + $0x30] sm:$0xff]  }
  0x3c   :  { %v436_v17 = vld [vmem:[#allocation7 + $0x38] sm:$0xff]  }
  0x3d   :  { %373 = vmatpush3.bf16.msra.mxu0 %v421_v2  ;;  %393 = vmatpush3.bf16.msra.mxu1 %v430_v6  ;;  %v341_v18 = vld [vmem:[%s651_s2] ss:$0 sm:$0xff]  ;;  %s538_s2 = smov [#allocation8]  }
  0x3e   :  { %374 = vmatprep.subr.bf16.mxu0 %v536_v0  ;;  %394 = vmatprep.subr.bf16.mxu1 %v536_v0  ;;  %v342_v20 = vld [vmem:[%s652_s3] ss:$0 sm:$0xff]  ;;  %s319_s14 = sshll.u32 %s538_s2, 4  ;;  %s320_s14 = int_to_ptr.vmem [resolvable:$true] %s319_s14 }
  0x3f   :  { %v343_v31 = vld [vmem:[%s654_s5] ss:$0 sm:$0xff]  ;;  %s503_s3 = scalar_lea.vmem %s320_s14, 256  ;;  %p508_p11 = scmp.lt.s32.totalorder %s320_s14, %s320_s14 }
  0x40   :  { %p504_p10 = scmp.ne.s32.totalorder %s320_s14, %s503_s3  ;;  %p509_p12 = scmp.lt.s32.totalorder %s503_s3, %s503_s3 }
  0x41   :  { %375 = vmatpush3.bf16.msra.mxu0 %v422_v3  ;;  %395 = vmatpush3.bf16.msra.mxu1 %v431_v8 }
  0x42   :  { %376 = vmatprep.subr.bf16.mxu0 %v536_v0  ;;  %396 = vmatprep.subr.bf16.mxu1 %v536_v0  ;;  %p510_p13 = por %p509_p12, %p508_p11 }
  0x44   :  { %p511_p0 = pnand %p510_p13, %p504_p10 }
  0x45   :  { %377 = vmatpush3.bf16.msra.mxu0 %v423_v5  ;;  %397 = vmatpush3.bf16.msra.mxu1 %v432_v10 }
  0x46   :  { %378 = vmatprep.subr.bf16.mxu0 %v536_v0  ;;  %398 = vmatprep.subr.bf16.mxu1 %v536_v0 }
  0x49   :  { %379 = vmatpush3.bf16.msra.mxu0 %v424_v7  ;;  %399 = vmatpush3.bf16.msra.mxu1 %v433_v12 }
  0x4a   :  { %380 = vmatprep.subr.bf16.mxu0 %v536_v0  ;;  %400 = vmatprep.subr.bf16.mxu1 %v536_v0 }
  0x4d   :  { %381 = vmatpush3.bf16.msra.mxu0 %v425_v9  ;;  %401 = vmatpush3.bf16.msra.mxu1 %v434_v15 }
  0x4e   :  { %382 = vmatprep.subr.bf16.mxu0 %v536_v0  ;;  %402 = vmatprep.subr.bf16.mxu1 %v536_v0 }
  0x51   :  { %383 = vmatpush3.bf16.msra.mxu0 %v426_v11  ;;  %403 = vmatpush3.bf16.msra.mxu1 %v435_v16 }
  0x52   :  { %384 = vmatprep.subr.bf16.mxu0 %v536_v0  ;;  %404 = vmatprep.subr.bf16.mxu1 %v536_v0 }
  0x55   :  { %385 = vmatpush3.bf16.msra.mxu0 %v427_v13  ;;  %405 = vmatpush3.bf16.msra.mxu1 %v436_v17 }
  0x58   :  { %387 = vmatmul.mubr.bf16.vlgmr.msra.gmra.mrb[0].mxu0 %v428_v14 }
 0x12b   :  { %v172_v19 = vpop.f32.mrb[0].mxu0 }
 0x12c   :  { %v186_v21 = vmul.f32 %v341_v18, %v172_v19  ;;  %v388_v22 = vpop.f32.mrb[1].mxu0 }
 0x12d   :  { %v175_v23 = vpop.f32.mrb[2].mxu0 }
 0x12e   :  { %v195_v24 = vadd.f32 %v342_v20, %v186_v21  ;;  %v187_v25 = vmul.f32 %v341_v18, %v175_v23  ;;  %v389_v26 = vpop.f32.mrb[3].mxu0 }
 0x130   :  { %v196_v27 = vadd.f32 %v342_v20, %v187_v25  ;;  %v197_v28 = vmax.f32 %v195_v24, 0.0 }
 0x132   :  { %v198_v29 = vmax.f32 %v196_v27, 0.0 }
 0x134   :  { %v199_v30 = vpack.c.bf16 %v198_v29, %v197_v28 }
 0x136   :  { %407 = vmatmul.mubr.bf16.vlgmr.msra.gmra.mrb[0].mxu1 %v199_v30 }
 0x209   :  { %v305_v32 = vpop.f32.mrb[0].mxu1 }
 0x20a   :  { %v306_v33 = vadd.f32 %v343_v31, %v305_v32  ;;  %v408_v34 = vpop.f32.mrb[1].mxu1 }
 0x20b   :  { %v308_v35 = vpop.f32.mrb[2].mxu1 }
 0x20c   :  { %312 = vst [vmem:[#allocation8] sm:$0xff] %v306_v33  ;;  %v309_v36 = vadd.f32 %v343_v31, %v308_v35  ;;  %v409_v37 = vpop.f32.mrb[3].mxu1 }
 0x20e   :  { %313 = vst [vmem:[#allocation8 + $0x8] sm:$0xff] %v309_v36 }
 0x20f   :  { %514 = shalt.err (!%p511_p0)
}
 0x210   :  { %s515_s16 = scalar_lea.hbm %s655_s6, 256 }
 0x211   :  { %p516_p1 = scmp.ne.s32.totalorder %s655_s6, %s515_s16  ;;  %p519_p2 = scmp.lt.u32.totalorder %s515_s16, %s655_s6 }
 0x213   :  { %p521_p3 = pnand %p519_p2, %p516_p1 }
 0x215   :  { %524 = shalt.err (!%p521_p3)
}
 0x216   :  { %s539_s1 = smov 128   ;;  %s540_s21 = smov 8  }
 0x217   :  { %325 = dma.vmem_to_hbm [thread:$0]  %s320_s14, 256, %s655_s6, [#allocation4], %s539_s1, %s539_s1, %s540_s21  }
 0x218   :  { %529 = dma.done.wait [#allocation4], 256  }
 0x219   :  { %530 = vsyncadd [#allocation4], 4294967040 }
 0x21a   :  { %329 = vsyncpa [#allocation3], 1 }
 0x21b   :  { %330 = vsyncpa [#allocation6], 1 }
 0x21c   :  { %331 = vsyncpa [#allocation4], 1 }

</bundles_post_ra>
